<compile_context>
chip_gen: v5e
topology: v5e:2x2
jax: 0.10.0
libtpu: 0.0.40
codegen_flags: <defaults>
</compile_context>

<pallas_src>
import jax
import jax.numpy as jnp
from jax.experimental import pallas as pl
from jax.experimental.pallas import tpu as pltpu


# ----------------------------- Pallas kernel -------------------------------

def _tanh_kernel(x_ref, o_ref):
    # Elementwise tanh; routed to the EUP, fully hidden under the HBM DMA.
    x = x_ref[...].astype(jnp.float32)
    o_ref[...] = jnp.tanh(x).astype(o_ref.dtype)


def _pick_tiling(n, itemsize):
    """Choose (lane, tile_rows, rows_padded) for a flat tensor of n elements."""
    lane = 1024                                   # lane-dense: 8 x 128 lanes
    max_block_bytes = 2 * 1024 * 1024             # ~2 MiB per block
    rows = (n + lane - 1) // lane
    max_rows = max(8, (max_block_bytes // (lane * itemsize)) // 8 * 8)
    if rows <= max_rows:
        tile_rows = rows                          # single full-extent block
        rows_padded = rows
    else:
        tile_rows = max_rows                      # multiple of 8
        rows_padded = ((rows + tile_rows - 1) // tile_rows) * tile_rows
    return lane, tile_rows, rows_padded


def tanh_pallas(x):
    """tanh(x) via a Pallas TPU kernel; returns same shape/dtype as x."""
    orig_shape = x.shape
    out_dtype = x.dtype
    n = x.size
    lane, tile_rows, rows_padded = _pick_tiling(n, jnp.dtype(out_dtype).itemsize)
    total = rows_padded * lane

    flat = x.reshape(-1)
    pad = total - n
    if pad > 0:
        # Tail-pad only when the element count isn't lane/tile aligned.
        flat = jnp.pad(flat, (0, pad))
    x2d = flat.reshape(rows_padded, lane)

    grid = (rows_padded // tile_rows,)
    out2d = pl.pallas_call(
        _tanh_kernel,
        out_shape=jax.ShapeDtypeStruct((rows_padded, lane), out_dtype),
        grid=grid,
        in_specs=[pl.BlockSpec((tile_rows, lane), lambda i: (i, 0))],
        out_specs=pl.BlockSpec((tile_rows, lane), lambda i: (i, 0)),
        compiler_params=pltpu.CompilerParams(
            dimension_semantics=("parallel",)),
    )(x2d)

    if pad > 0:
        return out2d.reshape(-1)[:n].reshape(orig_shape)
    return out2d.reshape(orig_shape)


# ------------------------ Module-equivalent wrappers ------------------------

class NormalDist:
    """Minimal stand-in for torch.distributions.Normal(tanh(logits), std)."""

    def __init__(self, logits, std):
        self._logits = logits
        self._std = std
        self._mean = None

    @property
    def mean(self):
        # p.mean == tanh(logits); computed once by the Pallas kernel.
        if self._mean is None:
            self._mean = tanh_pallas(self._logits)
        return self._mean

    @property
    def loc(self):
        return self.mean

    @property
    def stddev(self):
        return self._std

    @property
    def scale(self):
        return self._std

    # TODO(synk): sample()/rsample()/log_prob() of td.Normal are not part of
    # the module's forward compute; omitted (plain-JAX glue, not kernel work).


class BaseLikelihood:
    def __init__(self, domain_size):
        if isinstance(domain_size, (list, tuple)):
            d = 1
            for s in domain_size:
                d *= int(s)
            domain_size = d
        self._domain_size = domain_size

    @property
    def domain_size(self):
        return self._domain_size

    @property
    def params_size(self):
        raise NotImplementedError()

    # TODO(synk): get_scaler / fit_scaler depend on torch DataLoader + config
    # and have no Pallas equivalent; omitted (data-pipeline glue, not compute).


class NormalMeanLikelihoodTanh(BaseLikelihood):
    """JAX/Pallas port of imagegym.utils.likelihoods.NormalMeanLikelihoodTanh."""

    std = None

    def __init__(self, domain_size):
        super().__init__(domain_size)
        self.std = NormalMeanLikelihoodTanh.std

    @classmethod
    def create(cls, std):
        cls.std = std
        return cls

    @property
    def params_size(self):
        return self._domain_size

    def forward(self, logits, return_mean=False, dim=1):
        p = NormalDist(logits, self.std)
        if return_mean:
            return (p.mean, p)
        return p

    __call__ = forward


# ---------------------------------- main -----------------------------------

if __name__ == "__main__":
    key = jax.random.PRNGKey(0)
    # NCHW logits consistent with an image decoder head.
    N, C, H, W = 2, 4, 16, 16
    logits = jax.random.normal(key, (N, C, H, W), dtype=jnp.float32) * 3.0

    lik_cls = NormalMeanLikelihoodTanh.create(0.1)
    lik = lik_cls([C, H, W])
    mean, dist = lik(logits, return_mean=True)
    mean = jax.block_until_ready(mean)

    # Correctness checks against plain-JAX reference.
    ref = jnp.tanh(logits)
    assert mean.shape == logits.shape and mean.dtype == logits.dtype
    assert jnp.allclose(mean, ref, atol=1e-5, rtol=1e-5)
    assert dist.stddev == 0.1
    assert jnp.allclose(dist.mean, ref, atol=1e-5, rtol=1e-5)

    print("KERNEL_OK")
</pallas_src>

<mosaic_0001>
module attributes {stable_mosaic.version = 11 : i64} {
  func.func @_tanh_kernel(%arg0: i32, %arg1: memref<2x1024xf32, #tpu.memory_space<vmem>>, %arg2: memref<2x1024xf32, #tpu.memory_space<vmem>>) attributes {dimension_semantics = [#tpu.dimension_semantics<parallel>], iteration_bounds = array<i64: 1>, scalar_prefetch = 0 : i64, scratch_operands = 0 : i64, tpu.core_type = #tpu.core_type<tc>, window_params = [{transform_indices = @transform_0, window_bounds = array<i64: 2, 1024>}, {transform_indices = @transform_1, window_bounds = array<i64: 2, 1024>}]} {
    %c0 = arith.constant 0 : index
    %c0_0 = arith.constant 0 : index
    %0 = vector.load %arg1[%c0, %c0_0] : memref<2x1024xf32, #tpu.memory_space<vmem>>, vector<2x1024xf32>
    %1 = math.tanh %0 : vector<2x1024xf32>
    %c0_1 = arith.constant 0 : index
    %c0_2 = arith.constant 0 : index
    %2 = vector.load %arg2[%c0_1, %c0_2] : memref<2x1024xf32, #tpu.memory_space<vmem>>, vector<2x1024xf32>
    tpu.vector_store %arg2[%c0_1, %c0_2], %1 {strides = array<i32>} : memref<2x1024xf32, #tpu.memory_space<vmem>>, vector<2x1024xf32>,
    return
  }
  func.func @transform_0(%arg0: i32) -> (i32, i32) {
    %c0_i32 = arith.constant 0 : i32
    %c0_i32_0 = arith.constant 0 : i32
    return %arg0, %c0_i32 : i32, i32
  }
  func.func @transform_1(%arg0: i32) -> (i32, i32) {
    %c0_i32 = arith.constant 0 : i32
    %c0_i32_0 = arith.constant 0 : i32
    return %arg0, %c0_i32 : i32, i32
  }
}

</mosaic_0001>

<bundles_post_ra>
// kernel: tpu_custom_call.1
= control target key start
LH: loop header
LB: loop body
LE: loop exit
PB: predicated region body
PF: predicated region fallthrough
CT: control target
= control target key end

     0   :  { %6 = vsyncpa [#allocation3], 0  ;;  %s122_s0 = inlined_call_operand.hbm [shape: f32[2,1024], index: 0, kind: input, shape index: {}]   ;;  %s123_s1 = inlined_call_operand.hbm [shape: f32[2,1024], index: 1, kind: output, shape index: {}]  }
   0x1   :  { %7 = vsyncpa [#allocation4], 0  ;;  %s13_s8 = sshll.u32 %s122_s0, 4  ;;  %s104_s9 = smov [#allocation2]   ;;  %s14_s8 = int_to_ptr.hbm [resolvable:$true] %s13_s8 }
   0x2   :  { %s15_s10 = sshll.u32 %s104_s9, 4  ;;  %s16_s10 = int_to_ptr.vmem [resolvable:$true] %s15_s10 }
   0x3   :  { %18 = dma.hbm_to_vmem [thread:$0]  %s14_s8, 256, %s16_s10, [#allocation3]  }
   0x4   :  { %100 = dma.done.wait [#allocation3], 256  }
   0x5   :  { %101 = vsyncadd [#allocation3], 4294967040  ;;  %v23_v0 = vld [vmem:[#allocation2] sm:$0xff]  ;;  %v24_v1 = vld [vmem:[#allocation2 + $0x8] sm:$0xff]  ;;  %s105_s11 = smov [#allocation5]   ;;  %s36_s15 = sshll.u32 %s123_s1, 4  ;;  %s37_s15 = int_to_ptr.hbm [resolvable:$true] %s36_s15 }
   0x6   :  { %48 = vtanh.f32 %v23_v0  ;;  %s34_s12 = sshll.u32 %s105_s11, 4  ;;  %s35_s12 = int_to_ptr.vmem [resolvable:$true] %s34_s12 }
   0x7   :  { %50 = vtanh.f32 %v24_v1 }
   0xc   :  { %v49_v2 = vpop.eup %48 }
   0xd   :  { %v51_v3 = vpop.eup %50  ;;  %27 = vst [vmem:[#allocation5] sm:$0xff] %v49_v2 }
   0xe   :  { %28 = vst [vmem:[#allocation5 + $0x8] sm:$0xff] %v51_v3 }
   0xf   :  { %39 = dma.vmem_to_hbm [thread:$0]  %s35_s12, 256, %s37_s15, [#allocation4]  }
  0x10   :  { %102 = dma.done.wait [#allocation4], 256  }
  0x11   :  { %103 = vsyncadd [#allocation4], 4294967040 }
  0x12   :  { %44 = vsyncpa [#allocation3], 1 }
  0x13   :  { %45 = vsyncpa [#allocation4], 1 }

</bundles_post_ra>
